<compile_context>
chip_gen: v7x
topology: tpu7x:2x2x1
jax: 0.10.0
libtpu: 0.0.40
codegen_flags: <defaults>
</compile_context>

<pallas_src>
import functools

import jax
import jax.numpy as jnp
from jax.experimental import pallas as pl
from jax.experimental.pallas import tpu as pltpu


# ----------------------------------------------------------------------------
# Kernels
# ----------------------------------------------------------------------------
def _rowwise_norm_kernel(x_ref, ab_ref, o_ref, *, eps, d_model):
    """One logical row per (sublane-)row; feature dim on lanes (d >= 128 or fallback)."""
    x = x_ref[...].astype(jnp.float32)          # (rt, d)
    ab = ab_ref[...].astype(jnp.float32)        # (1, d)   == alpha + bias (both additive)

    mean = jnp.mean(x, axis=-1, keepdims=True)  # (rt, 1)
    diff = x - mean
    # torch.std default: unbiased (ddof = 1)
    var = jnp.sum(diff * diff, axis=-1, keepdims=True) * jnp.float32(1.0 / (d_model - 1))
    denom = jnp.sqrt(var) + jnp.float32(eps)    # eps added to std (matches reference)

    inv = pl.reciprocal(denom, approx=True)     # EUP; + one Newton step for f32 accuracy
    inv = inv * (jnp.float32(2.0) - denom * inv)

    o_ref[...] = (ab + diff * inv).astype(o_ref.dtype)


def _packed_norm_kernel(x_ref, seg_ref, ab_ref, o_ref, *, eps, d_model):
    """g = 128//d logical rows packed per 128-lane row (lane-dense I/O for d < 128).

    Per-segment sum + broadcast is a single matmul with a block-diagonal ones
    matrix (MXU has huge headroom; the kernel is memory-bound)."""
    x = x_ref[...].astype(jnp.float32)          # (rt, 128)
    seg = seg_ref[...]                          # (128, 128) block-diagonal ones, f32
    ab = ab_ref[...].astype(jnp.float32)        # (1, 128)  == alpha+bias tiled g times

    seg_sum = jnp.dot(x, seg, preferred_element_type=jnp.float32)
    mean = seg_sum * jnp.float32(1.0 / d_model)
    diff = x - mean
    seg_sq = jnp.dot(diff * diff, seg, preferred_element_type=jnp.float32)
    var = seg_sq * jnp.float32(1.0 / (d_model - 1))     # unbiased (ddof = 1)
    denom = jnp.sqrt(var) + jnp.float32(eps)

    inv = pl.reciprocal(denom, approx=True)
    inv = inv * (jnp.float32(2.0) - denom * inv)

    o_ref[...] = (ab + diff * inv).astype(o_ref.dtype)


# ----------------------------------------------------------------------------
# Tiling
# ----------------------------------------------------------------------------
def _choose_row_tile(n_rows, lanes, itemsize, *, target_block_bytes, vmem_budget_bytes,
                     row_tile=None):
    if n_rows <= 8:
        return n_rows                             # block == full array dim (allowed)
    rows_ceil8 = -(-n_rows // 8) * 8
    if row_tile is not None:
        return min(max(8, (int(row_tile) // 8) * 8), rows_ceil8)

    bytes_per_row_io = lanes * itemsize
    # VMEM per tile row: double-buffered input + output (I/O dtype) + ~3 f32 temporaries.
    bytes_per_row_vmem = 4 * lanes * itemsize + 3 * lanes * 4
    rt = min(target_block_bytes // bytes_per_row_io,
             vmem_budget_bytes // bytes_per_row_vmem,
             4096)
    rt = max(8, (int(rt) // 8) * 8)
    if rt >= rows_ceil8:
        # Whole problem fits in one tile: split into >=2 steps so a v7x megacore
        # ("parallel" grid axis) can shard across both TensorCores.
        rt = max(8, (-(-rows_ceil8 // 16)) * 8)
    return min(rt, rows_ceil8)


# ----------------------------------------------------------------------------
# Wrapper (== Encoder.forward with an empty layer list, then LayerNormalization)
# ----------------------------------------------------------------------------
def encoder_forward(x, alpha, bias, mask=None, *, eps=1e-6, row_tile=None,
                    target_block_bytes=2 << 20, vmem_budget_bytes=24 << 20):
    """x: (batch, seq, d_model); alpha/bias: (d_model,) additive params; mask unused."""
    b, s, d = x.shape
    assert d > 1, "unbiased std (ddof=1) needs d_model > 1"
    rows = b * s
    itemsize = jnp.dtype(x.dtype).itemsize

    # TODO(synk): run encoder blocks here once a concrete block class is provided;
    # with an empty ModuleList the forward pass is exactly the final LayerNorm.

    # alpha and bias are both purely additive -> fuse into one (1, d) stream.
    ab = (alpha.astype(jnp.float32) + bias.astype(jnp.float32)).reshape(1, d)

    g = (128 // d) if (d < 128 and 128 % d == 0) else 1
    packed = (g > 1) and (rows % g == 0)

    if packed:
        lanes = g * d                                   # == 128 (lane-dense I/O)
        n_rows = rows // g
        x2 = x.reshape(n_rows, lanes)                   # contiguous -> free reshape
        ab2 = jnp.tile(ab, (1, g))                      # (1, 128)
        lane = jnp.arange(lanes, dtype=jnp.int32)
        seg = (lane[:, None] // d == lane[None, :] // d).astype(jnp.float32)  # (128,128)
    else:
        lanes = d
        n_rows = rows
        x2 = x.reshape(n_rows, d)
        ab2 = ab

    rt = _choose_row_tile(n_rows, lanes, itemsize,
                          target_block_bytes=target_block_bytes,
                          vmem_budget_bytes=vmem_budget_bytes,
                          row_tile=row_tile)
    grid = (pl.cdiv(n_rows, rt),)                       # ragged last block masked by Pallas

    # Scoped VMEM limit from the real footprint (f32 temporaries included);
    # keep <= 48 MiB so it also fits v7x's 64 MiB physical VMEM.
    block_io = rt * lanes * itemsize
    block_f32 = rt * lanes * 4
    est = 4 * block_io + 4 * block_f32 + (2 * lanes * lanes * 4 if packed else 0)
    vmem_limit = int(min(48 << 20, max(32 << 20, 2 * est)))

    if packed:
        kernel = functools.partial(_packed_norm_kernel, eps=eps, d_model=d)
        in_specs = [
            pl.BlockSpec((rt, lanes), lambda i: (i, 0)),
            pl.BlockSpec((lanes, lanes), lambda i: (0, 0)),   # block-diag ones (const block)
            pl.BlockSpec((1, lanes), lambda i: (0, 0)),       # fused alpha+bias
        ]
        operands = (x2, seg, ab2)
    else:
        kernel = functools.partial(_rowwise_norm_kernel, eps=eps, d_model=d)
        in_specs = [
            pl.BlockSpec((rt, lanes), lambda i: (i, 0)),
            pl.BlockSpec((1, lanes), lambda i: (0, 0)),
        ]
        operands = (x2, ab2)

    out = pl.pallas_call(
        kernel,
        out_shape=jax.ShapeDtypeStruct((n_rows, lanes), x.dtype),
        grid_spec=pltpu.PrefetchScalarGridSpec(
            num_scalar_prefetch=0,
            grid=grid,
            in_specs=in_specs,
            out_specs=pl.BlockSpec((rt, lanes), lambda i: (i, 0)),
        ),
        compiler_params=pltpu.CompilerParams(
            dimension_semantics=("parallel",),
            vmem_limit_bytes=vmem_limit,
        ),
    )(*operands)

    return out.reshape(b, s, d)


def _reference(x, alpha, bias, eps=1e-6):
    mean = jnp.mean(x, axis=-1, keepdims=True)
    std = jnp.std(x, axis=-1, keepdims=True, ddof=1)
    return alpha + (x - mean) / (std + eps) + bias


if __name__ == "__main__":
    key = jax.random.PRNGKey(0)
    k1, k2, k3 = jax.random.split(key, 3)

    d_model = 32
    alpha = jnp.ones((d_model,), dtype=jnp.float32)
    bias = jnp.zeros((d_model,), dtype=jnp.float32)

    # Case 1: lane-dense packed path (d=32 -> 4 rows per 128-lane group).
    x1 = jax.random.normal(k1, (2, 8, d_model), dtype=jnp.float32)
    mask = jnp.ones((2, 1, 8, 8), dtype=jnp.float32)  # unused (no encoder blocks)
    out1 = encoder_forward(x1, alpha, bias, mask)
    jax.block_until_ready(out1)
    assert jnp.allclose(out1, _reference(x1, alpha, bias), atol=1e-4, rtol=1e-4), \
        "mismatch vs reference (case 1, packed path)"

    # Case 2: rows not divisible by the packing factor -> row-wise fallback with a
    # ragged (partial) last grid block and NO wrapper-side pad/slice.
    x2 = jax.random.normal(k2, (3, 37, d_model), dtype=jnp.float32)
    out2 = encoder_forward(x2, alpha, bias, None)
    jax.block_until_ready(out2)
    assert jnp.allclose(out2, _reference(x2, alpha, bias), atol=1e-4, rtol=1e-4), \
        "mismatch vs reference (case 2, ragged row-wise path)"

    # Case 3: d_model >= 128 (already lane-dense) with a partial last block.
    d3 = 256
    a3 = jnp.ones((d3,), dtype=jnp.float32)
    b3 = jnp.zeros((d3,), dtype=jnp.float32)
    x3 = jax.random.normal(k3, (2, 5, d3), dtype=jnp.float32)
    out3 = encoder_forward(x3, a3, b3, None)
    jax.block_until_ready(out3)
    assert jnp.allclose(out3, _reference(x3, a3, b3), atol=1e-4, rtol=1e-4), \
        "mismatch vs reference (case 3, wide-feature path)"

    print("KERNEL_OK")
</pallas_src>

<mosaic_0001>
module attributes {stable_mosaic.version = 11 : i64} {
  func.func @_packed_norm_kernel(%arg0: i32, %arg1: memref<4x128xf32, #tpu.memory_space<vmem>>, %arg2: memref<128x128xf32, #tpu.memory_space<vmem>>, %arg3: memref<1x128xf32, #tpu.memory_space<vmem>>, %arg4: memref<4x128xf32, #tpu.memory_space<vmem>>) attributes {dimension_semantics = [#tpu.dimension_semantics<parallel>], iteration_bounds = array<i64: 1>, scalar_prefetch = 0 : i64, scratch_operands = 0 : i64, tpu.core_type = #tpu.core_type<tc>, window_params = [{transform_indices = @transform_0, window_bounds = array<i64: 4, 128>}, {pipeline_mode = #tpu.pipeline_mode<synchronous>, transform_indices = @transform_1, window_bounds = array<i64: 128, 128>}, {pipeline_mode = #tpu.pipeline_mode<synchronous>, transform_indices = @transform_2, window_bounds = array<i64: 1, 128>}, {transform_indices = @transform_3, window_bounds = array<i64: 4, 128>}]} {
    %c0 = arith.constant 0 : index
    %c0_0 = arith.constant 0 : index
    %0 = vector.load %arg1[%c0, %c0_0] : memref<4x128xf32, #tpu.memory_space<vmem>>, vector<4x128xf32>
    %c0_1 = arith.constant 0 : index
    %c0_2 = arith.constant 0 : index
    %1 = vector.load %arg2[%c0_1, %c0_2] : memref<128x128xf32, #tpu.memory_space<vmem>>, vector<128x128xf32>
    %c0_3 = arith.constant 0 : index
    %c0_4 = arith.constant 0 : index
    %2 = vector.load %arg3[%c0_3, %c0_4] : memref<1x128xf32, #tpu.memory_space<vmem>>, vector<1x128xf32>
    %cst = arith.constant dense<0.000000e+00> : vector<4x128xf32>
    %3 = tpu.matmul %0, %1, %cst {dimension_numbers = #tpu.dot_dimension_numbers<[1], [0], [0], [1], [0, 0, 1, 1], [], []>} : vector<4x128xf32>, vector<128x128xf32>, vector<4x128xf32> -> vector<4x128xf32>
    %cst_5 = arith.constant 3.125000e-02 : f32
    %4 = vector.broadcast %cst_5 : f32 to vector<4x128xf32>
    %5 = arith.mulf %3, %4 : vector<4x128xf32>
    %6 = arith.subf %0, %5 : vector<4x128xf32>
    %7 = arith.mulf %6, %6 : vector<4x128xf32>
    %cst_6 = arith.constant dense<0.000000e+00> : vector<4x128xf32>
    %8 = tpu.matmul %7, %1, %cst_6 {dimension_numbers = #tpu.dot_dimension_numbers<[1], [0], [0], [1], [0, 0, 1, 1], [], []>} : vector<4x128xf32>, vector<128x128xf32>, vector<4x128xf32> -> vector<4x128xf32>
    %cst_7 = arith.constant 0.0322580636 : f32
    %9 = vector.broadcast %cst_7 : f32 to vector<4x128xf32>
    %10 = arith.mulf %8, %9 : vector<4x128xf32>
    %11 = math.sqrt %10 : vector<4x128xf32>
    %cst_8 = arith.constant 9.99999997E-7 : f32
    %12 = vector.broadcast %cst_8 : f32 to vector<4x128xf32>
    %13 = arith.addf %11, %12 : vector<4x128xf32>
    %14 = tpu.reciprocal %13 {approx = true} : vector<4x128xf32> -> vector<4x128xf32>
    %15 = arith.mulf %13, %14 : vector<4x128xf32>
    %cst_9 = arith.constant 2.000000e+00 : f32
    %16 = vector.broadcast %cst_9 : f32 to vector<4x128xf32>
    %17 = arith.subf %16, %15 : vector<4x128xf32>
    %18 = arith.mulf %14, %17 : vector<4x128xf32>
    %19 = arith.mulf %6, %18 : vector<4x128xf32>
    %20 = vector.broadcast %2 : vector<1x128xf32> to vector<4x128xf32>
    %21 = arith.addf %20, %19 : vector<4x128xf32>
    %c0_10 = arith.constant 0 : index
    %c0_11 = arith.constant 0 : index
    %22 = vector.load %arg4[%c0_10, %c0_11] : memref<4x128xf32, #tpu.memory_space<vmem>>, vector<4x128xf32>
    tpu.vector_store %arg4[%c0_10, %c0_11], %21 {strides = array<i32>} : memref<4x128xf32, #tpu.memory_space<vmem>>, vector<4x128xf32>,
    return
  }
  func.func @transform_0(%arg0: i32) -> (i32, i32) {
    %c0_i32 = arith.constant 0 : i32
    %c0_i32_0 = arith.constant 0 : i32
    return %arg0, %c0_i32 : i32, i32
  }
  func.func @transform_1(%arg0: i32) -> (i32, i32) {
    %c0_i32 = arith.constant 0 : i32
    %c0_i32_0 = arith.constant 0 : i32
    %c0_i32_1 = arith.constant 0 : i32
    return %c0_i32, %c0_i32_0 : i32, i32
  }
  func.func @transform_2(%arg0: i32) -> (i32, i32) {
    %c0_i32 = arith.constant 0 : i32
    %c0_i32_0 = arith.constant 0 : i32
    %c0_i32_1 = arith.constant 0 : i32
    return %c0_i32, %c0_i32_0 : i32, i32
  }
  func.func @transform_3(%arg0: i32) -> (i32, i32) {
    %c0_i32 = arith.constant 0 : i32
    %c0_i32_0 = arith.constant 0 : i32
    return %arg0, %c0_i32 : i32, i32
  }
}

</mosaic_0001>

<bundles_post_ra>
// kernel: tpu_custom_call.1
= control target key start
LH: loop header
LB: loop body
LE: loop exit
PB: predicated region body
PF: predicated region fallthrough
CT: control target
= control target key end

     0   :  { %8 = vsyncpa [#allocation3], 0  ;;  %s551_s0 = inlined_call_operand.hbm [shape: f32[4,128], index: 0, kind: input, shape index: {}]   ;;  %s552_s1 = inlined_call_operand.hbm [shape: f32[128,128], index: 1, kind: input, shape index: {}]   ;;  %s553_s2 = inlined_call_operand.vmem [shape: f32[1,128], index: 2, kind: input, shape index: {}]   ;;  %s554_s3 = inlined_call_operand.hbm [shape: f32[4,128], index: 3, kind: output, shape index: {}]  }
   0x1   :  { %9 = vsyncpa [#allocation6], 0 }
   0x2   :  { %10 = vsyncpa [#allocation4], 0  ;;  %s477_s12 = smov [#allocation2]   ;;  %s478_s14 = smov [#allocation5]  }
   0x3   :  { %s17_s13 = sshll.u32 %s477_s12, 4  ;;  %s26_s15 = sshll.u32 %s478_s14, 4  ;;  %s18_s13 = int_to_ptr.vmem [resolvable:$true] %s17_s13  ;;  %s505_s15 = int_to_ptr.vmem [resolvable:$true] %s26_s15 }
   0x4   :  { %s405_s18 = scalar_lea.hbm %s551_s0, 64 }
   0x5   :  { %p406_p0 = scmp.ne.s32.totalorder %s551_s0, %s405_s18  ;;  %p409_p1 = scmp.lt.u32.totalorder %s405_s18, %s551_s0 }
   0x7   :  { %p411_p2 = pnand %p409_p1, %p406_p0 }
   0x9   :  { %414 = shalt.err (!%p411_p2)
}
   0xa   :  { %s415_s23 = scalar_lea.vmem %s18_s13, 64  ;;  %p420_p4 = scmp.lt.s32.totalorder %s18_s13, %s18_s13 }
   0xb   :  { %p416_p3 = scmp.ne.s32.totalorder %s18_s13, %s415_s23  ;;  %p421_p5 = scmp.lt.s32.totalorder %s415_s23, %s415_s23 }
   0xd   :  { %p422_p6 = por %p421_p5, %p420_p4 }
   0xf   :  { %p423_p7 = pnand %p422_p6, %p416_p3 }
  0x11   :  { %426 = shalt.err (!%p423_p7)
}
  0x12   :  { %20 = dma.hbm_to_vmem [thread:$0]  %s551_s0, 64, %s18_s13, [#allocation3]  }
  0x13   :  { %s427_s28 = scalar_lea.hbm %s552_s1, 2048 }
  0x14   :  { %p428_p8 = scmp.ne.s32.totalorder %s552_s1, %s427_s28  ;;  %p431_p9 = scmp.lt.u32.totalorder %s427_s28, %s552_s1 }
  0x16   :  { %p433_p10 = pnand %p431_p9, %p428_p8 }
  0x18   :  { %436 = shalt.err (!%p433_p10)
}
  0x19   :  { %s437_s6 = scalar_lea.vmem %s505_s15, 2048  ;;  %p442_p12 = scmp.lt.s32.totalorder %s505_s15, %s505_s15 }
  0x1a   :  { %p438_p11 = scmp.ne.s32.totalorder %s505_s15, %s437_s6  ;;  %p443_p13 = scmp.lt.s32.totalorder %s437_s6, %s437_s6 }
  0x1c   :  { %p444_p0 = por %p443_p13, %p442_p12 }
  0x1e   :  { %p445_p1 = pnand %p444_p0, %p438_p11 }
  0x20   :  { %448 = shalt.err (!%p445_p1)
}
  0x21   :  { %s479_s0 = smov 128   ;;  %s480_s7 = smov 8  }
  0x22   :  { %32 = dma.hbm_to_vmem [thread:$0]  %s552_s1, 2048, %s505_s15, [#allocation6], %s479_s0, %s479_s0, %s480_s7  }
  0x23   :  { %471 = dma.done.wait [#allocation3], 64  }
  0x24   :  { %472 = vsyncadd [#allocation3], 4294967232 }
  0x25   :  { %473 = dma.done.wait [#allocation6], 2048  }
  0x26   :  { %474 = vsyncadd [#allocation6], 4294965248  ;;  %v481_v0 = vmov 0.0|0.0   ;;  %vm482_vm0 = vmmov 0   ;;  %v483_v1 = vmov 0.0   ;;  %v42_v2 = vld [vmem:[#allocation5] sm:$0xff] }
  0x27   :  { %345 = vmatprep.subr.bf16.mxu0 %v481_v0  ;;  %307 = vmatprep.mubr.msk.f32.mxu0 %vm482_vm0, %v483_v1  ;;  %v43_v3 = vld [vmem:[#allocation5 + $0x8] sm:$0xff]  ;;  %v44_v4 = vld [vmem:[#allocation5 + $0x10] sm:$0xff]  ;;  %v45_v6 = vld [vmem:[#allocation5 + $0x18] sm:$0xff]  ;;  %s484_s11 = smov [#allocation7]  }
  0x28   :  { %369 = vmatprep.subr.bf16.mxu1 %v481_v0  ;;  %342 = vmatprep.mubr.msk.f32.mxu1 %vm482_vm0, %v483_v1  ;;  %v346_v5 = vpack.c.bf16 %v43_v3, %v42_v2  ;;  %v349_v7 = vpack.c.bf16 %v45_v6, %v44_v4  ;;  %v46_v8 = vld [vmem:[#allocation5 + $0x20] sm:$0xff]  ;;  %v47_v9 = vld [vmem:[#allocation5 + $0x28] sm:$0xff]  ;;  %v48_v11 = vld [vmem:[#allocation5 + $0x30] sm:$0xff]  ;;  %s230_s12 = sshll.u32 %s484_s11, 4  ;;  %s231_s12 = int_to_ptr.vmem [resolvable:$true] %s230_s12 }
  0x29   :  { %v352_v10 = vpack.c.bf16 %v47_v9, %v46_v8  ;;  %v49_v12 = vld [vmem:[#allocation5 + $0x38] sm:$0xff]  ;;  %v50_v14 = vld [vmem:[#allocation5 + $0x40] sm:$0xff]  ;;  %v51_v15 = vld [vmem:[#allocation5 + $0x48] sm:$0xff]  ;;  %s449_s13 = scalar_lea.vmem %s231_s12, 64  ;;  %p454_p3 = scmp.lt.s32.totalorder %s231_s12, %s231_s12 }
  0x2a   :  { %347 = vmatpush3.bf16.msra.mxu0 %v346_v5  ;;  %371 = vmatpush3.bf16.msra.mxu1 %v346_v5  ;;  %v355_v13 = vpack.c.bf16 %v49_v12, %v48_v11  ;;  %v358_v16 = vpack.c.bf16 %v51_v15, %v50_v14  ;;  %v52_v17 = vld [vmem:[#allocation5 + $0x50] sm:$0xff]  ;;  %v53_v18 = vld [vmem:[#allocation5 + $0x58] sm:$0xff]  ;;  %v54_v20 = vld [vmem:[#allocation5 + $0x60] sm:$0xff]  ;;  %p450_p2 = scmp.ne.s32.totalorder %s231_s12, %s449_s13  ;;  %p455_p4 = scmp.lt.s32.totalorder %s449_s13, %s449_s13 }
  0x2b   :  { %348 = vmatprep.subr.bf16.mxu0 %v481_v0  ;;  %372 = vmatprep.subr.bf16.mxu1 %v481_v0  ;;  %v361_v19 = vpack.c.bf16 %v53_v18, %v52_v17  ;;  %v55_v21 = vld [vmem:[#allocation5 + $0x68] sm:$0xff]  ;;  %v56_v23 = vld [vmem:[#allocation5 + $0x70] sm:$0xff]  ;;  %v57_v24 = vld [vmem:[#allocation5 + $0x78] sm:$0xff] }
  0x2c   :  { %v364_v22 = vpack.c.bf16 %v55_v21, %v54_v20  ;;  %v367_v25 = vpack.c.bf16 %v57_v24, %v56_v23  ;;  %v41_v26 = vld [vmem:[#allocation2] sm:$0xf]  ;;  %p456_p5 = por %p455_p4, %p454_p3 }
  0x2d   :  { %v240_v45 = vld [vmem:[%s553_s2] ss:$0 sm:$0xff] }
  0x2e   :  { %350 = vmatpush3.bf16.msra.mxu0 %v349_v7  ;;  %374 = vmatpush3.bf16.msra.mxu1 %v349_v7  ;;  %p457_p6 = pnand %p456_p5, %p450_p2 }
  0x2f   :  { %351 = vmatprep.subr.bf16.mxu0 %v481_v0  ;;  %375 = vmatprep.subr.bf16.mxu1 %v481_v0 }
  0x32   :  { %353 = vmatpush3.bf16.msra.mxu0 %v352_v10  ;;  %377 = vmatpush3.bf16.msra.mxu1 %v352_v10 }
  0x33   :  { %354 = vmatprep.subr.bf16.mxu0 %v481_v0  ;;  %378 = vmatprep.subr.bf16.mxu1 %v481_v0 }
  0x36   :  { %356 = vmatpush3.bf16.msra.mxu0 %v355_v13  ;;  %380 = vmatpush3.bf16.msra.mxu1 %v355_v13 }
  0x37   :  { %357 = vmatprep.subr.bf16.mxu0 %v481_v0  ;;  %381 = vmatprep.subr.bf16.mxu1 %v481_v0 }
  0x3a   :  { %359 = vmatpush3.bf16.msra.mxu0 %v358_v16  ;;  %383 = vmatpush3.bf16.msra.mxu1 %v358_v16 }
  0x3b   :  { %360 = vmatprep.subr.bf16.mxu0 %v481_v0  ;;  %384 = vmatprep.subr.bf16.mxu1 %v481_v0 }
  0x3e   :  { %362 = vmatpush3.bf16.msra.mxu0 %v361_v19  ;;  %386 = vmatpush3.bf16.msra.mxu1 %v361_v19 }
  0x3f   :  { %363 = vmatprep.subr.bf16.mxu0 %v481_v0  ;;  %387 = vmatprep.subr.bf16.mxu1 %v481_v0 }
  0x42   :  { %365 = vmatpush3.bf16.msra.mxu0 %v364_v22  ;;  %389 = vmatpush3.bf16.msra.mxu1 %v364_v22 }
  0x43   :  { %366 = vmatprep.subr.bf16.mxu0 %v481_v0  ;;  %390 = vmatprep.subr.bf16.mxu1 %v481_v0 }
  0x46   :  { %368 = vmatpush3.bf16.msra.mxu0 %v367_v25  ;;  %392 = vmatpush3.bf16.msra.mxu1 %v367_v25 }
  0x49   :  { %308 = vmatmul.mubr.f32.vlgmr.msra.gmra.mrb[0].mxu0 %v41_v26 }
 0x11c   :  { %v125_v27 = vpop.f32.mrb[0].mxu0 }
 0x11d   :  { %v129_v28 = vmul.f32 0.03125, %v125_v27  ;;  %v309_v29 = vpop.f32.mrb[1].mxu0 }
 0x11f   :  { %v130_v30 = vsub.f32 %v41_v26, %v129_v28 }
 0x121   :  { %v131_v31 = vmul.f32 %v130_v30, %v130_v30 }
 0x123   :  { %343 = vmatmul.mubr.f32.vlgmr.msra.gmra.mrb[0].mxu1 %v131_v31 }
 0x1f6   :  { %v198_v32 = vpop.f32.mrb[0].mxu1 }
 0x1f7   :  { %v202_v33 = vmul.f32 0.032258064, %v198_v32  ;;  %v344_v34 = vpop.f32.mrb[1].mxu1 }
 0x1f9   :  { %401 = vrsqrt.f32 %v202_v33  ;;  %vm205_vm1 = vcmp.eq.f32.partialorder %v202_v33, inf  ;;  %v208_v37 = vand.u32 2147483648, %v202_v33  ;;  %vm207_vm2 = vcmp.eq.f32.partialorder %v202_v33, 0.0 }
 0x203   :  { %v402_v35 = vpop.eup %401 }
 0x204   :  { %v204_v36 = vmul.f32 %v402_v35, %v202_v33 }
 0x206   :  { %v206_v38 = vsel %vm205_vm1, %v202_v33, %v204_v36 }
 0x207   :  { %v209_v39 = vsel %vm207_vm2, %v208_v37, %v206_v38 }
 0x208   :  { %v210_v40 = vadd.f32 1e-06, %v209_v39 }
 0x20a   :  { %403 = vrcp.f32 %v210_v40 }
 0x214   :  { %v404_v41 = vpop.eup %403 }
 0x215   :  { %v212_v42 = vmul.f32 %v404_v41, %v210_v40 }
 0x217   :  { %v213_v43 = vsub.f32 2.0, %v212_v42 }
 0x219   :  { %v214_v44 = vmul.f32 %v404_v41, %v213_v43 }
 0x21b   :  { %v215_v46 = vmul.f32 %v214_v44, %v130_v30 }
 0x21d   :  { %v222_v47 = vadd.f32 %v240_v45, %v215_v46 }
 0x21f   :  { %223 = vst [vmem:[#allocation7] sm:$0xf] %v222_v47 }
 0x220   :  { %460 = shalt.err (!%p457_p6)
}
 0x221   :  { %s461_s16 = scalar_lea.hbm %s554_s3, 64 }
 0x222   :  { %p462_p7 = scmp.ne.s32.totalorder %s554_s3, %s461_s16  ;;  %p465_p8 = scmp.lt.u32.totalorder %s461_s16, %s554_s3 }
 0x224   :  { %p467_p9 = pnand %p465_p8, %p462_p7 }
 0x226   :  { %470 = shalt.err (!%p467_p9)
}
 0x227   :  { %233 = dma.vmem_to_hbm [thread:$0]  %s231_s12, 64, %s554_s3, [#allocation4]  }
 0x228   :  { %475 = dma.done.wait [#allocation4], 64  }
 0x229   :  { %476 = vsyncadd [#allocation4], 4294967232 }
 0x22a   :  { %237 = vsyncpa [#allocation3], 1 }
 0x22b   :  { %238 = vsyncpa [#allocation6], 1 }
 0x22c   :  { %239 = vsyncpa [#allocation4], 1 }

</bundles_post_ra>
